<compile_context>
chip_gen: v7x
topology: tpu7x:2x2x1
jax: 0.10.0
libtpu: 0.0.40
codegen_flags: <defaults>
</compile_context>

<pallas_src>
import jax
import jax.numpy as jnp
from jax.experimental import pallas as pl
from jax.experimental.pallas import tpu as pltpu


def _make_reshift_kernel(scale, offset, compute_in_f32):
    scale = float(scale)
    offset = float(offset)

    def kernel(x_ref, o_ref):
        xv = x_ref[...]
        if compute_in_f32:
            xv = xv.astype(jnp.float32)
        o_ref[...] = (xv * scale + offset).astype(o_ref.dtype)

    return kernel


def _max_tile_bytes():
    """Per-generation tile cap.

    v6e / v7x: 4 MiB tiles -> (in + out) x 2 double-buffers = 16 MiB, well
    inside their 32 MiB default scoped VMEM. Everything else (incl. v5e with
    its 16 MiB scoped default): keep 2 MiB tiles so 4x tile bytes still fits.
    """
    try:
        kind = jax.devices()[0].device_kind.lower()
    except Exception:
        kind = ""
    if ("v6" in kind) or ("v7" in kind) or ("7x" in kind):
        return 4 * 1024 * 1024
    return 2 * 1024 * 1024


def _compiler_params():
    return pltpu.CompilerParams(dimension_semantics=("parallel",))


def _pick_tile_rows(m, lane, item, max_tile_bytes):
    """Rows per tile for an (m, lane) slab."""
    slab_bytes = m * lane * item
    if m < 64 or slab_bytes <= (1 << 20):
        # Small slab: one full-array block (always a legal block shape).
        return m
    rows = max_tile_bytes // (lane * item)
    # Keep >= ~4 grid steps so the parallel axis can shard across v7x's two
    # TensorCores and the DMA pipeline has iterations to overlap.
    rows = min(rows, pl.cdiv(m, 4))
    # Multiple of 32 sublanes: native boundaries for f32/bf16/int8/fp8 packing.
    rows = max(32, (rows // 32) * 32)
    return min(rows, m)


def _reshift_2d(x2d, kernel, out_dtype, max_tile_bytes, cost):
    m, lane = x2d.shape
    item = max(jnp.dtype(x2d.dtype).itemsize, jnp.dtype(out_dtype).itemsize)
    tile_rows = _pick_tile_rows(m, lane, item, max_tile_bytes)
    grid = (pl.cdiv(m, tile_rows),)
    return pl.pallas_call(
        kernel,
        out_shape=jax.ShapeDtypeStruct((m, lane), out_dtype),
        grid=grid,
        in_specs=[pl.BlockSpec((tile_rows, lane), lambda i: (i, 0))],
        out_specs=pl.BlockSpec((tile_rows, lane), lambda i: (i, 0)),
        compiler_params=_compiler_params(),
        cost_estimate=cost,
    )(x2d)


def _reshift_1d(flat, kernel, out_dtype, max_tile_bytes, cost):
    """Ragged path (element count not a multiple of 128): run directly on the
    flat array; Pallas masks the ragged final block. No pad, no slice."""
    n = flat.shape[0]
    item = max(jnp.dtype(flat.dtype).itemsize, jnp.dtype(out_dtype).itemsize)
    max_elems = max_tile_bytes // item
    if n <= max_elems:
        tile = n  # full-array block: always legal, grid = (1,)
    else:
        tile = max(1024, (min(max_elems, pl.cdiv(n, 4)) // 1024) * 1024)
    grid = (pl.cdiv(n, tile),)
    return pl.pallas_call(
        kernel,
        out_shape=jax.ShapeDtypeStruct((n,), out_dtype),
        grid=grid,
        in_specs=[pl.BlockSpec((tile,), lambda i: (i,))],
        out_specs=pl.BlockSpec((tile,), lambda i: (i,)),
        compiler_params=_compiler_params(),
        cost_estimate=cost,
    )(flat)


def reshift(x, scale=2.0, offset=-1.0):
    """Elementwise x * scale + offset via a Pallas TPU kernel.

    Layout-agnostic and bandwidth-bound: the input is viewed as a lane-dense
    2D slab when possible (keeping the natural trailing dim if it is already a
    multiple of 128), or streamed as a flat 1D array with a masked ragged tail
    block otherwise. Integer inputs promote to float32 (PyTorch semantics).
    """
    scale = float(scale)
    offset = float(offset)
    is_float_in = jnp.issubdtype(x.dtype, jnp.floating)
    out_dtype = x.dtype if is_float_in else jnp.float32

    n = int(x.size)
    if n == 0:
        return jnp.zeros(x.shape, out_dtype)

    kernel = _make_reshift_kernel(scale, offset, compute_in_f32=not is_float_in)
    mtb = _max_tile_bytes()
    cost = pl.CostEstimate(
        flops=2 * n,
        transcendentals=0,
        bytes_accessed=n * jnp.dtype(x.dtype).itemsize
        + n * jnp.dtype(out_dtype).itemsize,
    )

    # Fast path: trailing dim already lane-aligned and of reasonable width ->
    # collapse only the leading dims (avoids a possible relayout from a full
    # flatten on non-default layouts).
    if x.ndim >= 2 and x.shape[-1] % 128 == 0 and x.shape[-1] <= 8192:
        x2d = x.reshape(-1, x.shape[-1])
        out2d = _reshift_2d(x2d, kernel, out_dtype, mtb, cost)
        return out2d.reshape(x.shape)

    flat = x.reshape(-1)
    lane = next((c for c in (1024, 512, 256, 128) if n % c == 0), None)
    if lane is None:
        # Element count not a multiple of 128: 1D kernel, ragged final block.
        out_flat = _reshift_1d(flat, kernel, out_dtype, mtb, cost)
    else:
        out2d = _reshift_2d(flat.reshape(-1, lane), kernel, out_dtype, mtb, cost)
        out_flat = out2d.reshape(-1)
    return out_flat.reshape(x.shape)


if __name__ == "__main__":
    root = jax.random.PRNGKey(0)
    k0, k1, k2 = jax.random.split(root, 3)
    scale, offset = 2.0, -1.0

    # Primary case: small NCHW-style activation input (2D slab path, lane=1024).
    x = jax.random.normal(k0, (2, 4, 16, 16), dtype=jnp.float32)
    out = jax.block_until_ready(reshift(x, scale, offset))
    ref = x * scale + offset
    assert out.shape == x.shape and out.dtype == x.dtype
    assert jnp.allclose(out, ref, atol=1e-6, rtol=1e-6)

    # Lane-aligned trailing dim (collapse-leading-dims path), bf16 compute.
    xb = jax.random.normal(k1, (2, 8, 128), dtype=jnp.bfloat16)
    outb = jax.block_until_ready(reshift(xb, scale, offset))
    refb = xb * jnp.bfloat16(scale) + jnp.bfloat16(offset)
    assert outb.shape == xb.shape and outb.dtype == xb.dtype
    assert jnp.allclose(outb.astype(jnp.float32), refb.astype(jnp.float32),
                        atol=1e-2, rtol=1e-2)

    # Ragged element count (105 elements): 1D path, no pad / slice passes.
    xr = jax.random.normal(k2, (3, 5, 7), dtype=jnp.float32)
    outr = jax.block_until_ready(reshift(xr, scale, offset))
    refr = xr * scale + offset
    assert outr.shape == xr.shape and outr.dtype == xr.dtype
    assert jnp.allclose(outr, refr, atol=1e-6, rtol=1e-6)

    print("KERNEL_OK")
</pallas_src>

<mosaic_0001>
module attributes {stable_mosaic.version = 11 : i64} {
  func.func @kernel(%arg0: i32, %arg1: memref<2x1024xf32, #tpu.memory_space<vmem>>, %arg2: memref<2x1024xf32, #tpu.memory_space<vmem>>) attributes {dimension_semantics = [#tpu.dimension_semantics<parallel>], iteration_bounds = array<i64: 1>, scalar_prefetch = 0 : i64, scratch_operands = 0 : i64, tpu.core_type = #tpu.core_type<tc>, window_params = [{transform_indices = @transform_0, window_bounds = array<i64: 2, 1024>}, {transform_indices = @transform_1, window_bounds = array<i64: 2, 1024>}]} {
    %c0 = arith.constant 0 : index
    %c0_0 = arith.constant 0 : index
    %0 = vector.load %arg1[%c0, %c0_0] : memref<2x1024xf32, #tpu.memory_space<vmem>>, vector<2x1024xf32>
    %cst = arith.constant 2.000000e+00 : f32
    %1 = vector.broadcast %cst : f32 to vector<2x1024xf32>
    %2 = arith.mulf %0, %1 : vector<2x1024xf32>
    %cst_1 = arith.constant -1.000000e+00 : f32
    %3 = vector.broadcast %cst_1 : f32 to vector<2x1024xf32>
    %4 = arith.addf %2, %3 : vector<2x1024xf32>
    %c0_2 = arith.constant 0 : index
    %c0_3 = arith.constant 0 : index
    %5 = vector.load %arg2[%c0_2, %c0_3] : memref<2x1024xf32, #tpu.memory_space<vmem>>, vector<2x1024xf32>
    tpu.vector_store %arg2[%c0_2, %c0_3], %4 {strides = array<i32>} : memref<2x1024xf32, #tpu.memory_space<vmem>>, vector<2x1024xf32>,
    return
  }
  func.func @transform_0(%arg0: i32) -> (i32, i32) {
    %c0_i32 = arith.constant 0 : i32
    %c0_i32_0 = arith.constant 0 : i32
    return %arg0, %c0_i32 : i32, i32
  }
  func.func @transform_1(%arg0: i32) -> (i32, i32) {
    %c0_i32 = arith.constant 0 : i32
    %c0_i32_0 = arith.constant 0 : i32
    return %arg0, %c0_i32 : i32, i32
  }
}

</mosaic_0001>

<bundles_post_ra>
// kernel: tpu_custom_call.1
= control target key start
LH: loop header
LB: loop body
LE: loop exit
PB: predicated region body
PF: predicated region fallthrough
CT: control target
= control target key end

     0   :  { %6 = vsyncpa [#allocation3], 0  ;;  %s130_s0 = inlined_call_operand.hbm [shape: f32[2,1024], index: 0, kind: input, shape index: {}]   ;;  %s131_s1 = inlined_call_operand.hbm [shape: f32[2,1024], index: 1, kind: output, shape index: {}]  }
   0x1   :  { %7 = vsyncpa [#allocation4], 0  ;;  %s94_s6 = smov [#allocation2]   ;;  %s46_s10 = scalar_lea.hbm %s130_s0, 256 }
   0x2   :  { %s14_s7 = sshll.u32 %s94_s6, 4  ;;  %p47_p0 = scmp.ne.s32.totalorder %s130_s0, %s46_s10  ;;  %s15_s7 = int_to_ptr.vmem [resolvable:$true] %s14_s7 }
   0x3   :  { %p50_p1 = scmp.lt.u32.totalorder %s46_s10, %s130_s0 }
   0x5   :  { %p52_p2 = pnand %p50_p1, %p47_p0 }
   0x7   :  { %55 = shalt.err (!%p52_p2)
}
   0x8   :  { %s56_s15 = scalar_lea.vmem %s15_s7, 256  ;;  %p61_p4 = scmp.lt.s32.totalorder %s15_s7, %s15_s7 }
   0x9   :  { %p57_p3 = scmp.ne.s32.totalorder %s15_s7, %s56_s15  ;;  %p62_p5 = scmp.lt.s32.totalorder %s56_s15, %s56_s15 }
   0xb   :  { %p63_p6 = por %p62_p5, %p61_p4 }
   0xd   :  { %p64_p7 = pnand %p63_p6, %p57_p3 }
   0xf   :  { %67 = shalt.err (!%p64_p7)
}
  0x10   :  { %17 = dma.hbm_to_vmem [thread:$0]  %s130_s0, 256, %s15_s7, [#allocation3]  }
  0x11   :  { %90 = dma.done.wait [#allocation3], 256  }
  0x12   :  { %91 = vsyncadd [#allocation3], 4294967040  ;;  %v21_v0 = vld [vmem:[#allocation2] sm:$0xff]  ;;  %v22_v1 = vld [vmem:[#allocation2 + $0x8] sm:$0xff]  ;;  %s95_s18 = smov [#allocation5]  }
  0x13   :  { %s35_s19 = sshll.u32 %s95_s18, 4  ;;  %v23_v2 = vmul.f32 2.0, %v21_v0  ;;  %v24_v3 = vmul.f32 2.0, %v22_v1  ;;  %s36_s19 = int_to_ptr.vmem [resolvable:$true] %s35_s19 }
  0x14   :  { %s68_s20 = scalar_lea.vmem %s36_s19, 256  ;;  %p73_p9 = scmp.lt.s32.totalorder %s36_s19, %s36_s19 }
  0x15   :  { %v25_v4 = vadd.f32 -1.0, %v23_v2  ;;  %v26_v5 = vadd.f32 -1.0, %v24_v3  ;;  %p69_p8 = scmp.ne.s32.totalorder %s36_s19, %s68_s20  ;;  %p74_p10 = scmp.lt.s32.totalorder %s68_s20, %s68_s20 }
  0x17   :  { %27 = vst [vmem:[#allocation5] sm:$0xff] %v25_v4  ;;  %28 = vst [vmem:[#allocation5 + $0x8] sm:$0xff] %v26_v5  ;;  %p75_p11 = por %p74_p10, %p73_p9 }
  0x19   :  { %p76_p12 = pnand %p75_p11, %p69_p8 }
  0x1b   :  { %79 = shalt.err (!%p76_p12)
}
  0x1c   :  { %s80_s22 = scalar_lea.hbm %s131_s1, 256 }
  0x1d   :  { %p81_p13 = scmp.ne.s32.totalorder %s131_s1, %s80_s22  ;;  %p84_p0 = scmp.lt.u32.totalorder %s80_s22, %s131_s1 }
  0x1f   :  { %p86_p1 = pnand %p84_p0, %p81_p13 }
  0x21   :  { %89 = shalt.err (!%p86_p1)
}
  0x22   :  { %38 = dma.vmem_to_hbm [thread:$0]  %s36_s19, 256, %s131_s1, [#allocation4]  }
  0x23   :  { %92 = dma.done.wait [#allocation4], 256  }
  0x24   :  { %93 = vsyncadd [#allocation4], 4294967040 }
  0x25   :  { %42 = vsyncpa [#allocation3], 1 }
  0x26   :  { %43 = vsyncpa [#allocation4], 1 }

</bundles_post_ra>
